<compile_context>
chip_gen: v7x
topology: tpu7x:2x2x1
jax: 0.10.0
libtpu: 0.0.40
codegen_flags: <defaults>
</compile_context>

<pallas_src>
import functools

import jax
import jax.numpy as jnp
import numpy as np
from jax import lax
from jax.experimental import pallas as pl
from jax.experimental.pallas import tpu as pltpu

IGNORE_INDEX = 255.0
C_PARAM = 0.2
LANES = 128
SUBLANES = 8
MAX_BLOCK_ROWS = 4096            # 4096*128*4B = 2 MiB per f32 input block
MAX_CORE_SPLITS = 2              # leading "parallel" axis -> megacore split
_VMEM_RAISE_THRESHOLD = 12 * 1024 * 1024
_VMEM_LIMIT_BYTES = 40 * 1024 * 1024


@functools.partial(
    jax.jit, static_argnames=("c", "ignore_index", "reduction", "max_block_rows"))
def berhu_loss(out, label, c=C_PARAM, ignore_index=IGNORE_INDEX,
               reduction="mean", max_block_rows=MAX_BLOCK_ROWS):
    """out, label: [B, 1, H, W] float (channel dim must be 1, as in the module)."""
    assert out.shape == label.shape
    assert max_block_rows % SUBLANES == 0
    n = int(np.prod(out.shape))

    # Keep the original storage dtype (f32/bf16); upcast happens inside the
    # kernel after the block is in VMEM (halves HBM reads for bf16 inputs and
    # removes the separate host-side cast sweep).
    def _flat2d(x, pad_value):
        x = x.reshape(-1)
        if x.dtype not in (jnp.float32, jnp.bfloat16):
            x = x.astype(jnp.float32)           # fallback for exotic dtypes
        pad = (-n) % (SUBLANES * LANES)         # rows become a multiple of 8
        if pad:
            x = jnp.pad(x, (0, pad), constant_values=pad_value)
        return x.reshape(-1, LANES)

    out2 = _flat2d(out, 0.0)
    lab2 = _flat2d(label, ignore_index)         # padded tail is masked (ignore)
    rows = out2.shape[0]

    block_rows = rows if rows <= max_block_rows else max_block_rows
    groups = block_rows // SUBLANES
    nblocks = -(-rows // block_rows)
    splits = min(MAX_CORE_SPLITS, nblocks)      # one split per TensorCore (v7x)
    inner = -(-nblocks // splits)
    grid = (splits, inner)

    def _data_map(p, j, *_):
        # Clamp so the DMA never starts past the array; clamped duplicate blocks
        # are fully masked in-kernel via the row-bound test.
        return (jnp.minimum(p * inner + j, nblocks - 1), 0)

    def _part_map(p, j, *_):
        return (p, 0)

    data_spec = pl.BlockSpec((block_rows, LANES), _data_map)
    part_spec = pl.BlockSpec((1, LANES), _part_map)

    def _valid_and_diff(out_ref, lab_ref):
        # Loop-invariant sublane iota; only the scalar bound changes per step.
        # Handles the partial last block, the lane/row padding tail and any
        # clamped duplicate block in one compare.
        blk = pl.program_id(0) * pl.num_programs(1) + pl.program_id(1)
        row_ok = (lax.broadcasted_iota(jnp.int32, (block_rows, LANES), 0)
                  < rows - blk * block_rows)
        lab = lab_ref[...].astype(jnp.float32)
        valid = (lab != ignore_index) & row_ok
        diff = jnp.where(valid, jnp.abs(out_ref[...].astype(jnp.float32) - lab), 0.0)
        return valid, diff

    # Raise the scoped-VMEM limit only when the double-buffered input demand
    # actually needs it (keeps small/default configs on the compiler default).
    in_bytes = 2 * block_rows * LANES * (out2.dtype.itemsize + lab2.dtype.itemsize)
    vmem_limit = _VMEM_LIMIT_BYTES if in_bytes > _VMEM_RAISE_THRESHOLD else None
    cparams = pltpu.CompilerParams(
        dimension_semantics=("parallel", "arbitrary"),
        vmem_limit_bytes=vmem_limit)
    pass_bytes = int(out2.size * out2.dtype.itemsize
                     + lab2.size * lab2.dtype.itemsize)

    # ------------- pass 1: masked max(|diff|) and valid-element count -------------
    def _stats_kernel(out_ref, lab_ref, maxp_ref, cntp_ref, amax_ref, acnt_ref):
        j = pl.program_id(1)

        @pl.when(j == 0)
        def _():
            amax_ref[...] = jnp.zeros_like(amax_ref)
            acnt_ref[...] = jnp.zeros_like(acnt_ref)

        valid, diff = _valid_and_diff(out_ref, lab_ref)
        # Fold the block into (8,128) accumulators with a grouped pure-VPU
        # reduction: one accumulator RMW per step instead of one per row-vreg.
        amax_ref[...] = jnp.maximum(
            amax_ref[...], jnp.max(diff.reshape(groups, SUBLANES, LANES), axis=0))
        acnt_ref[...] += jnp.sum(
            valid.astype(jnp.int32).reshape(groups, SUBLANES, LANES), axis=0)

        @pl.when(j == pl.num_programs(1) - 1)       # cross-sublane reduce once per core
        def _():
            maxp_ref[...] = jnp.max(amax_ref[...], axis=0, keepdims=True)
            cntp_ref[...] = jnp.sum(acnt_ref[...], axis=0, keepdims=True)

    max_part, cnt_part = pl.pallas_call(
        _stats_kernel,
        out_shape=(jax.ShapeDtypeStruct((splits, LANES), jnp.float32),
                   jax.ShapeDtypeStruct((splits, LANES), jnp.int32)),
        grid=grid,
        in_specs=[data_spec, data_spec],
        out_specs=(part_spec, part_spec),
        scratch_shapes=[pltpu.VMEM((SUBLANES, LANES), jnp.float32),
                        pltpu.VMEM((SUBLANES, LANES), jnp.int32)],
        compiler_params=cparams,
        cost_estimate=pl.CostEstimate(
            flops=10 * rows * LANES, transcendentals=0, bytes_accessed=pass_bytes),
    )(out2, lab2)

    # ---------------- pass 2: masked sum of BerHu(diff) ----------------
    maxp_spec = pl.BlockSpec((splits, LANES), lambda p, j: (0, 0))

    def _berhu_sum_kernel(maxp_ref, out_ref, lab_ref, sump_ref, asum_ref):
        j = pl.program_id(1)

        @pl.when(j == 0)
        def _():
            asum_ref[...] = jnp.zeros_like(asum_ref)

        # BerHu threshold / quadratic coefficients from pass-1 partials (a 1-2
        # vreg XLU reduce plus a few scalar ops; off the VPU critical path).
        # delta == 0 (all-masked / all-zero diffs / c == 0) -> threshold = +inf
        # so the linear branch (berhu = diff) is always taken, and the unselected
        # quadratic branch stays finite (no NaN).
        delta = c * jnp.max(maxp_ref[...])
        thr = jnp.where(delta > 0, delta, jnp.inf)
        inv_2delta = jnp.where(delta > 0, 0.5 / jnp.maximum(delta, 1e-30), 0.0)
        half_delta = 0.5 * delta

        _, diff = _valid_and_diff(out_ref, lab_ref)
        quad = diff * diff * inv_2delta + half_delta
        berhu = jnp.where(diff <= thr, diff, quad)   # masked rows: diff == 0 -> 0
        asum_ref[...] += jnp.sum(berhu.reshape(groups, SUBLANES, LANES), axis=0)

        @pl.when(j == pl.num_programs(1) - 1)
        def _():
            sump_ref[...] = jnp.sum(asum_ref[...], axis=0, keepdims=True)

    sum_part = pl.pallas_call(
        _berhu_sum_kernel,
        out_shape=jax.ShapeDtypeStruct((splits, LANES), jnp.float32),
        grid=grid,
        in_specs=[maxp_spec, data_spec, data_spec],
        out_specs=part_spec,
        scratch_shapes=[pltpu.VMEM((SUBLANES, LANES), jnp.float32)],
        compiler_params=cparams,
        cost_estimate=pl.CostEstimate(
            flops=13 * rows * LANES, transcendentals=0, bytes_accessed=pass_bytes),
    )(max_part, out2, lab2)

    # Trivial scalar glue: combine per-core lane partials.
    berhu_sum = jnp.sum(sum_part)
    n_valid = jnp.sum(cnt_part)                      # exact int32 count
    if reduction == "mean":
        return berhu_sum / jnp.maximum(n_valid.astype(jnp.float32), 1.0)
    elif reduction == "sum":
        return berhu_sum
    else:
        # TODO(synk): reduction='none' returns a data-dependent-shape masked_select;
        # not expressible as a static-shape Pallas output.
        raise NotImplementedError("reduction='none' not supported")


if __name__ == "__main__":
    key = jax.random.PRNGKey(0)
    k1, k2, k3 = jax.random.split(key, 3)

    def ref_loss(out_a, lab_a, reduction):
        # Pure-numpy reference (same math as the PyTorch module), in float64.
        o = np.asarray(jnp.asarray(out_a, dtype=jnp.float32), dtype=np.float64)
        l = np.asarray(jnp.asarray(lab_a, dtype=jnp.float32), dtype=np.float64)
        m = l != IGNORE_INDEX
        diff = np.abs(o - l)[m]
        delta = C_PARAM * (diff.max() if diff.size else 0.0)
        if delta > 0:
            berhu = np.where(diff <= delta, diff,
                             (diff ** 2 + delta ** 2) / (2 * delta))
        else:
            berhu = diff
        return berhu.sum() / max(int(m.sum()), 1) if reduction == "mean" else berhu.sum()

    # Small [B, 1, H, W] case (single block).
    B, C, H, W = 2, 1, 16, 16
    out = jax.random.normal(k1, (B, C, H, W), dtype=jnp.float32) * 2.0
    label = jax.random.normal(k2, (B, C, H, W), dtype=jnp.float32)
    ignore_mask = jax.random.bernoulli(k3, 0.1, (B, C, H, W))
    label = jnp.where(ignore_mask, IGNORE_INDEX, label)

    loss_mean = jax.block_until_ready(berhu_loss(out, label, reduction="mean"))
    loss_sum = jax.block_until_ready(berhu_loss(out, label, reduction="sum"))
    assert np.allclose(float(loss_mean), ref_loss(out, label, "mean"),
                       rtol=1e-4, atol=1e-5), (float(loss_mean), ref_loss(out, label, "mean"))
    assert np.allclose(float(loss_sum), ref_loss(out, label, "sum"),
                       rtol=1e-4, atol=1e-4), (float(loss_sum), ref_loss(out, label, "sum"))

    # Multi-block / core-split / clamped-duplicate path (tiny blocks to exercise
    # the grid: rows=24, block_rows=8 -> 3 blocks -> grid (2, 2) with one fully
    # masked duplicate block).
    B2, H2, W2 = 3, 32, 32
    out_b = jax.random.normal(k1, (B2, 1, H2, W2), dtype=jnp.float32) * 2.0
    lab_b = jax.random.normal(k2, (B2, 1, H2, W2), dtype=jnp.float32)
    ign_b = jax.random.bernoulli(k3, 0.15, (B2, 1, H2, W2))
    lab_b = jnp.where(ign_b, IGNORE_INDEX, lab_b)
    loss_b = jax.block_until_ready(
        berhu_loss(out_b, lab_b, reduction="mean", max_block_rows=8))
    assert np.allclose(float(loss_b), ref_loss(out_b, lab_b, "mean"),
                       rtol=1e-4, atol=1e-5), (float(loss_b), ref_loss(out_b, lab_b, "mean"))

    # bf16 inputs exercise the in-kernel upcast path (no host-side f32 sweep).
    out_c = out_b.astype(jnp.bfloat16)
    lab_c = lab_b.astype(jnp.bfloat16)
    loss_c = jax.block_until_ready(berhu_loss(out_c, lab_c, reduction="mean"))
    assert np.allclose(float(loss_c), ref_loss(out_c, lab_c, "mean"),
                       rtol=2e-2, atol=1e-3), (float(loss_c), ref_loss(out_c, lab_c, "mean"))

    print("KERNEL_OK")
</pallas_src>

<mosaic_0001>
module attributes {stable_mosaic.version = 11 : i64} {
  func.func @_stats_kernel(%arg0: i32, %arg1: i32, %arg2: memref<8x128xf32, #tpu.memory_space<vmem>>, %arg3: memref<8x128xf32, #tpu.memory_space<vmem>>, %arg4: memref<1x128xf32, #tpu.memory_space<vmem>>, %arg5: memref<1x128xi32, #tpu.memory_space<vmem>>, %arg6: memref<8x128xf32, #tpu.memory_space<vmem>>, %arg7: memref<8x128xi32, #tpu.memory_space<vmem>>) attributes {dimension_semantics = [#tpu.dimension_semantics<parallel>, #tpu.dimension_semantics<arbitrary>], iteration_bounds = array<i64: 1, 1>, scalar_prefetch = 0 : i64, scratch_operands = 2 : i64, tpu.core_type = #tpu.core_type<tc>, window_params = [{transform_indices = @transform_0, window_bounds = array<i64: 8, 128>}, {transform_indices = @transform_1, window_bounds = array<i64: 8, 128>}, {transform_indices = @transform_2, window_bounds = array<i64: 1, 128>}, {transform_indices = @transform_3, window_bounds = array<i64: 1, 128>}]} {
    %c0_i32 = arith.constant 0 : i32
    %0 = arith.cmpi eq, %arg1, %c0_i32 : i32
    %1 = arith.extui %0 : i1 to i32
    %c0_i32_0 = arith.constant 0 : i32
    %2 = arith.cmpi ne, %1, %c0_i32_0 : i32
    scf.if %2 {
      %cst_18 = arith.constant 0.000000e+00 : f32
      %33 = vector.broadcast %cst_18 : f32 to vector<8x128xf32>
      %c0_19 = arith.constant 0 : index
      %c0_20 = arith.constant 0 : index
      %34 = vector.load %arg6[%c0_19, %c0_20] : memref<8x128xf32, #tpu.memory_space<vmem>>, vector<8x128xf32>
      tpu.vector_store %arg6[%c0_19, %c0_20], %33 {strides = array<i32>} : memref<8x128xf32, #tpu.memory_space<vmem>>, vector<8x128xf32>,
      %c0_i32_21 = arith.constant 0 : i32
      %35 = vector.broadcast %c0_i32_21 : i32 to vector<8x128xi32>
      %c0_22 = arith.constant 0 : index
      %c0_23 = arith.constant 0 : index
      %36 = vector.load %arg7[%c0_22, %c0_23] : memref<8x128xi32, #tpu.memory_space<vmem>>, vector<8x128xi32>
      tpu.vector_store %arg7[%c0_22, %c0_23], %35 {strides = array<i32>} : memref<8x128xi32, #tpu.memory_space<vmem>>, vector<8x128xi32>,
    } else {
    }
    %c1_i32 = arith.constant 1 : i32
    %3 = arith.muli %arg0, %c1_i32 : i32
    %4 = arith.addi %3, %arg1 : i32
    %5 = tpu.iota {dimensions = array<i32: 0>} : vector<8x128xi32>
    %c8_i32 = arith.constant 8 : i32
    %6 = arith.muli %4, %c8_i32 : i32
    %c8_i32_1 = arith.constant 8 : i32
    %7 = arith.subi %c8_i32_1, %6 : i32
    %8 = vector.broadcast %7 : i32 to vector<8x128xi32>
    %9 = arith.cmpi slt, %5, %8 : vector<8x128xi32>
    %c0 = arith.constant 0 : index
    %c0_2 = arith.constant 0 : index
    %10 = vector.load %arg3[%c0, %c0_2] : memref<8x128xf32, #tpu.memory_space<vmem>>, vector<8x128xf32>
    %cst = arith.constant 2.550000e+02 : f32
    %11 = vector.broadcast %cst : f32 to vector<8x128xf32>
    %12 = arith.cmpf one, %10, %11 : vector<8x128xf32>
    %13 = arith.andi %12, %9 : vector<8x128xi1>
    %c0_3 = arith.constant 0 : index
    %c0_4 = arith.constant 0 : index
    %14 = vector.load %arg2[%c0_3, %c0_4] : memref<8x128xf32, #tpu.memory_space<vmem>>, vector<8x128xf32>
    %15 = arith.subf %14, %10 : vector<8x128xf32>
    %16 = math.absf %15 : vector<8x128xf32>
    %cst_5 = arith.constant 0.000000e+00 : f32
    %17 = vector.broadcast %cst_5 : f32 to vector<8x128xf32>
    %18 = arith.select %13, %16, %17 : vector<8x128xi1>, vector<8x128xf32>
    %c0_6 = arith.constant 0 : index
    %c0_7 = arith.constant 0 : index
    %19 = vector.load %arg6[%c0_6, %c0_7] : memref<8x128xf32, #tpu.memory_space<vmem>>, vector<8x128xf32>
    %20 = vector.shape_cast %18 : vector<8x128xf32> to vector<1x8x128xf32>
    %cst_8 = arith.constant dense<0xFF800000> : vector<8x128xf32>
    %21 = vector.multi_reduction <maximumf>, %20, %cst_8 [0] : vector<1x8x128xf32> to vector<8x128xf32>
    %22 = arith.maximumf %19, %21 : vector<8x128xf32>
    %c0_9 = arith.constant 0 : index
    %c0_10 = arith.constant 0 : index
    %23 = vector.load %arg6[%c0_9, %c0_10] : memref<8x128xf32, #tpu.memory_space<vmem>>, vector<8x128xf32>
    tpu.vector_store %arg6[%c0_9, %c0_10], %22 {strides = array<i32>} : memref<8x128xf32, #tpu.memory_space<vmem>>, vector<8x128xf32>,
    %c0_11 = arith.constant 0 : index
    %c0_12 = arith.constant 0 : index
    %24 = vector.load %arg7[%c0_11, %c0_12] : memref<8x128xi32, #tpu.memory_space<vmem>>, vector<8x128xi32>
    %25 = arith.extui %13 : vector<8x128xi1> to vector<8x128xi32>
    %26 = vector.shape_cast %25 : vector<8x128xi32> to vector<1x8x128xi32>
    %cst_13 = arith.constant dense<0> : vector<8x128xi32>
    %27 = vector.multi_reduction <add>, %26, %cst_13 [0] : vector<1x8x128xi32> to vector<8x128xi32>
    %28 = arith.addi %24, %27 : vector<8x128xi32>
    %c0_14 = arith.constant 0 : index
    %c0_15 = arith.constant 0 : index
    %29 = vector.load %arg7[%c0_14, %c0_15] : memref<8x128xi32, #tpu.memory_space<vmem>>, vector<8x128xi32>
    tpu.vector_store %arg7[%c0_14, %c0_15], %28 {strides = array<i32>} : memref<8x128xi32, #tpu.memory_space<vmem>>, vector<8x128xi32>,
    %c0_i32_16 = arith.constant 0 : i32
    %30 = arith.cmpi eq, %arg1, %c0_i32_16 : i32
    %31 = arith.extui %30 : i1 to i32
    %c0_i32_17 = arith.constant 0 : i32
    %32 = arith.cmpi ne, %31, %c0_i32_17 : i32
    scf.if %32 {
      %c0_18 = arith.constant 0 : index
      %c0_19 = arith.constant 0 : index
      %33 = vector.load %arg6[%c0_18, %c0_19] : memref<8x128xf32, #tpu.memory_space<vmem>>, vector<8x128xf32>
      %cst_20 = arith.constant dense<0xFF800000> : vector<128xf32>
      %34 = vector.multi_reduction <maximumf>, %33, %cst_20 [0] : vector<8x128xf32> to vector<128xf32>
      %35 = vector.shape_cast %34 : vector<128xf32> to vector<1x128xf32>
      %c0_21 = arith.constant 0 : index
      %c0_22 = arith.constant 0 : index
      %36 = vector.load %arg4[%c0_21, %c0_22] : memref<1x128xf32, #tpu.memory_space<vmem>>, vector<1x128xf32>
      tpu.vector_store %arg4[%c0_21, %c0_22], %35 {strides = array<i32>} : memref<1x128xf32, #tpu.memory_space<vmem>>, vector<1x128xf32>,
      %c0_23 = arith.constant 0 : index
      %c0_24 = arith.constant 0 : index
      %37 = vector.load %arg7[%c0_23, %c0_24] : memref<8x128xi32, #tpu.memory_space<vmem>>, vector<8x128xi32>
      %cst_25 = arith.constant dense<0> : vector<128xi32>
      %38 = vector.multi_reduction <add>, %37, %cst_25 [0] : vector<8x128xi32> to vector<128xi32>
      %39 = vector.shape_cast %38 : vector<128xi32> to vector<1x128xi32>
      %c0_26 = arith.constant 0 : index
      %c0_27 = arith.constant 0 : index
      %40 = vector.load %arg5[%c0_26, %c0_27] : memref<1x128xi32, #tpu.memory_space<vmem>>, vector<1x128xi32>
      tpu.vector_store %arg5[%c0_26, %c0_27], %39 {strides = array<i32>} : memref<1x128xi32, #tpu.memory_space<vmem>>, vector<1x128xi32>,
    } else {
    }
    return
  }
  func.func @transform_0(%arg0: i32, %arg1: i32) -> (i32, i32) {
    %c1_i32 = arith.constant 1 : i32
    %0 = arith.muli %arg0, %c1_i32 : i32
    %1 = arith.addi %0, %arg1 : i32
    %c0_i32 = arith.constant 0 : i32
    %2 = arith.minsi %1, %c0_i32 : i32
    %c0_i32_0 = arith.constant 0 : i32
    %c0_i32_1 = arith.constant 0 : i32
    return %2, %c0_i32_0 : i32, i32
  }
  func.func @transform_1(%arg0: i32, %arg1: i32) -> (i32, i32) {
    %c1_i32 = arith.constant 1 : i32
    %0 = arith.muli %arg0, %c1_i32 : i32
    %1 = arith.addi %0, %arg1 : i32
    %c0_i32 = arith.constant 0 : i32
    %2 = arith.minsi %1, %c0_i32 : i32
    %c0_i32_0 = arith.constant 0 : i32
    %c0_i32_1 = arith.constant 0 : i32
    return %2, %c0_i32_0 : i32, i32
  }
  func.func @transform_2(%arg0: i32, %arg1: i32) -> (i32, i32) {
    %c0_i32 = arith.constant 0 : i32
    %c0_i32_0 = arith.constant 0 : i32
    return %arg0, %c0_i32 : i32, i32
  }
  func.func @transform_3(%arg0: i32, %arg1: i32) -> (i32, i32) {
    %c0_i32 = arith.constant 0 : i32
    %c0_i32_0 = arith.constant 0 : i32
    return %arg0, %c0_i32 : i32, i32
  }
}

module attributes {stable_mosaic.version = 11 : i64} {
  func.func @_berhu_sum_kernel(%arg0: i32, %arg1: i32, %arg2: memref<1x128xf32, #tpu.memory_space<vmem>>, %arg3: memref<8x128xf32, #tpu.memory_space<vmem>>, %arg4: memref<8x128xf32, #tpu.memory_space<vmem>>, %arg5: memref<1x128xf32, #tpu.memory_space<vmem>>, %arg6: memref<8x128xf32, #tpu.memory_space<vmem>>) attributes {dimension_semantics = [#tpu.dimension_semantics<parallel>, #tpu.dimension_semantics<arbitrary>], iteration_bounds = array<i64: 1, 1>, scalar_prefetch = 0 : i64, scratch_operands = 1 : i64, tpu.core_type = #tpu.core_type<tc>, window_params = [{pipeline_mode = #tpu.pipeline_mode<synchronous>, transform_indices = @transform_0, window_bounds = array<i64: 1, 128>}, {transform_indices = @transform_1, window_bounds = array<i64: 8, 128>}, {transform_indices = @transform_2, window_bounds = array<i64: 8, 128>}, {transform_indices = @transform_3, window_bounds = array<i64: 1, 128>}]} {
    %c0_i32 = arith.constant 0 : i32
    %0 = arith.cmpi eq, %arg1, %c0_i32 : i32
    %1 = arith.extui %0 : i1 to i32
    %c0_i32_0 = arith.constant 0 : i32
    %2 = arith.cmpi ne, %1, %c0_i32_0 : i32
    scf.if %2 {
      %cst_24 = arith.constant 0.000000e+00 : f32
      %48 = vector.broadcast %cst_24 : f32 to vector<8x128xf32>
      %c0_25 = arith.constant 0 : index
      %c0_26 = arith.constant 0 : index
      %49 = vector.load %arg6[%c0_25, %c0_26] : memref<8x128xf32, #tpu.memory_space<vmem>>, vector<8x128xf32>
      tpu.vector_store %arg6[%c0_25, %c0_26], %48 {strides = array<i32>} : memref<8x128xf32, #tpu.memory_space<vmem>>, vector<8x128xf32>,
    } else {
    }
    %c0 = arith.constant 0 : index
    %c0_1 = arith.constant 0 : index
    %3 = vector.load %arg2[%c0, %c0_1] : memref<1x128xf32, #tpu.memory_space<vmem>>, vector<1x128xf32>
    %4 = vector.shape_cast %3 : vector<1x128xf32> to vector<1x1x128xf32>
    %cst = arith.constant dense<0xFF800000> : vector<1xf32>
    %5 = vector.multi_reduction <maximumf>, %4, %cst [1, 2] : vector<1x1x128xf32> to vector<1xf32>
    %6 = vector.shape_cast %5 : vector<1xf32> to vector<1x1x1xf32>
    %7 = vector.extract %6[0, 0, 0] : f32 from vector<1x1x1xf32>
    %cst_2 = arith.constant 2.000000e-01 : f32
    %8 = arith.mulf %cst_2, %7 : f32
    %cst_3 = arith.constant 0.000000e+00 : f32
    %9 = arith.cmpf ogt, %8, %cst_3 : f32
    %cst_4 = arith.constant 0x7F800000 : f32
    %10 = arith.select %9, %8, %cst_4 : f32
    %cst_5 = arith.constant 0.000000e+00 : f32
    %11 = arith.cmpf ogt, %8, %cst_5 : f32
    %cst_6 = arith.constant 1.000000e-30 : f32
    %12 = arith.maximumf %8, %cst_6 : f32
    %cst_7 = arith.constant 5.000000e-01 : f32
    %13 = arith.divf %cst_7, %12 : f32
    %cst_8 = arith.constant 0.000000e+00 : f32
    %14 = arith.select %11, %13, %cst_8 : f32
    %cst_9 = arith.constant 5.000000e-01 : f32
    %15 = arith.mulf %cst_9, %8 : f32
    %c1_i32 = arith.constant 1 : i32
    %16 = arith.muli %arg0, %c1_i32 : i32
    %17 = arith.addi %16, %arg1 : i32
    %18 = tpu.iota {dimensions = array<i32: 0>} : vector<8x128xi32>
    %c8_i32 = arith.constant 8 : i32
    %19 = arith.muli %17, %c8_i32 : i32
    %c8_i32_10 = arith.constant 8 : i32
    %20 = arith.subi %c8_i32_10, %19 : i32
    %21 = vector.broadcast %20 : i32 to vector<8x128xi32>
    %22 = arith.cmpi slt, %18, %21 : vector<8x128xi32>
    %c0_11 = arith.constant 0 : index
    %c0_12 = arith.constant 0 : index
    %23 = vector.load %arg4[%c0_11, %c0_12] : memref<8x128xf32, #tpu.memory_space<vmem>>, vector<8x128xf32>
    %cst_13 = arith.constant 2.550000e+02 : f32
    %24 = vector.broadcast %cst_13 : f32 to vector<8x128xf32>
    %25 = arith.cmpf one, %23, %24 : vector<8x128xf32>
    %26 = arith.andi %25, %22 : vector<8x128xi1>
    %c0_14 = arith.constant 0 : index
    %c0_15 = arith.constant 0 : index
    %27 = vector.load %arg3[%c0_14, %c0_15] : memref<8x128xf32, #tpu.memory_space<vmem>>, vector<8x128xf32>
    %28 = arith.subf %27, %23 : vector<8x128xf32>
    %29 = math.absf %28 : vector<8x128xf32>
    %cst_16 = arith.constant 0.000000e+00 : f32
    %30 = vector.broadcast %cst_16 : f32 to vector<8x128xf32>
    %31 = arith.select %26, %29, %30 : vector<8x128xi1>, vector<8x128xf32>
    %32 = arith.mulf %31, %31 : vector<8x128xf32>
    %33 = vector.broadcast %14 : f32 to vector<8x128xf32>
    %34 = arith.mulf %32, %33 : vector<8x128xf32>
    %35 = vector.broadcast %15 : f32 to vector<8x128xf32>
    %36 = arith.addf %34, %35 : vector<8x128xf32>
    %37 = vector.broadcast %10 : f32 to vector<8x128xf32>
    %38 = arith.cmpf ole, %31, %37 : vector<8x128xf32>
    %39 = arith.select %38, %31, %36 : vector<8x128xi1>, vector<8x128xf32>
    %c0_17 = arith.constant 0 : index
    %c0_18 = arith.constant 0 : index
    %40 = vector.load %arg6[%c0_17, %c0_18] : memref<8x128xf32, #tpu.memory_space<vmem>>, vector<8x128xf32>
    %41 = vector.shape_cast %39 : vector<8x128xf32> to vector<1x8x128xf32>
    %cst_19 = arith.constant dense<0.000000e+00> : vector<8x128xf32>
    %42 = vector.multi_reduction <add>, %41, %cst_19 [0] : vector<1x8x128xf32> to vector<8x128xf32>
    %43 = arith.addf %40, %42 : vector<8x128xf32>
    %c0_20 = arith.constant 0 : index
    %c0_21 = arith.constant 0 : index
    %44 = vector.load %arg6[%c0_20, %c0_21] : memref<8x128xf32, #tpu.memory_space<vmem>>, vector<8x128xf32>
    tpu.vector_store %arg6[%c0_20, %c0_21], %43 {strides = array<i32>} : memref<8x128xf32, #tpu.memory_space<vmem>>, vector<8x128xf32>,
    %c0_i32_22 = arith.constant 0 : i32
    %45 = arith.cmpi eq, %arg1, %c0_i32_22 : i32
    %46 = arith.extui %45 : i1 to i32
    %c0_i32_23 = arith.constant 0 : i32
    %47 = arith.cmpi ne, %46, %c0_i32_23 : i32
    scf.if %47 {
      %c0_24 = arith.constant 0 : index
      %c0_25 = arith.constant 0 : index
      %48 = vector.load %arg6[%c0_24, %c0_25] : memref<8x128xf32, #tpu.memory_space<vmem>>, vector<8x128xf32>
      %cst_26 = arith.constant dense<0.000000e+00> : vector<128xf32>
      %49 = vector.multi_reduction <add>, %48, %cst_26 [0] : vector<8x128xf32> to vector<128xf32>
      %50 = vector.shape_cast %49 : vector<128xf32> to vector<1x128xf32>
      %c0_27 = arith.constant 0 : index
      %c0_28 = arith.constant 0 : index
      %51 = vector.load %arg5[%c0_27, %c0_28] : memref<1x128xf32, #tpu.memory_space<vmem>>, vector<1x128xf32>
      tpu.vector_store %arg5[%c0_27, %c0_28], %50 {strides = array<i32>} : memref<1x128xf32, #tpu.memory_space<vmem>>, vector<1x128xf32>,
    } else {
    }
    return
  }
  func.func @transform_0(%arg0: i32, %arg1: i32) -> (i32, i32) {
    %c0_i32 = arith.constant 0 : i32
    %c0_i32_0 = arith.constant 0 : i32
    %c0_i32_1 = arith.constant 0 : i32
    return %c0_i32, %c0_i32_0 : i32, i32
  }
  func.func @transform_1(%arg0: i32, %arg1: i32) -> (i32, i32) {
    %c1_i32 = arith.constant 1 : i32
    %0 = arith.muli %arg0, %c1_i32 : i32
    %1 = arith.addi %0, %arg1 : i32
    %c0_i32 = arith.constant 0 : i32
    %2 = arith.minsi %1, %c0_i32 : i32
    %c0_i32_0 = arith.constant 0 : i32
    %c0_i32_1 = arith.constant 0 : i32
    return %2, %c0_i32_0 : i32, i32
  }
  func.func @transform_2(%arg0: i32, %arg1: i32) -> (i32, i32) {
    %c1_i32 = arith.constant 1 : i32
    %0 = arith.muli %arg0, %c1_i32 : i32
    %1 = arith.addi %0, %arg1 : i32
    %c0_i32 = arith.constant 0 : i32
    %2 = arith.minsi %1, %c0_i32 : i32
    %c0_i32_0 = arith.constant 0 : i32
    %c0_i32_1 = arith.constant 0 : i32
    return %2, %c0_i32_0 : i32, i32
  }
  func.func @transform_3(%arg0: i32, %arg1: i32) -> (i32, i32) {
    %c0_i32 = arith.constant 0 : i32
    %c0_i32_0 = arith.constant 0 : i32
    return %arg0, %c0_i32 : i32, i32
  }
}

</mosaic_0001>

<bundles_post_ra>
// kernel: berhu_loss.2
= control target key start
LH: loop header
LB: loop body
LE: loop exit
PB: predicated region body
PF: predicated region fallthrough
CT: control target
= control target key end

     0   :  { %v134_v3 = vmov 0   ;;  %s167_s0 = inlined_call_operand.vmem [shape: f32[8,128], index: 0, kind: input, shape index: {}]   ;;  %s168_s1 = inlined_call_operand.vmem [shape: f32[8,128], index: 1, kind: input, shape index: {}]   ;;  %s169_s3 = inlined_call_operand.vmem [shape: s32[1,128], index: 3, kind: output, shape index: {1}]   ;;  %s170_s2 = inlined_call_operand.vmem [shape: f32[1,128], index: 2, kind: output, shape index: {0}]  }
   0x1   :  { %v80_v0 = vld [vmem:[%s168_s1] sm:$0xff] }
   0x2   :  { %v83_v1 = vld [vmem:[%s167_s0] sm:$0xff]  ;;  %vm81_vm0 = vcmp.ne.f32.partialorder %v80_v0, 255.0 }
   0x3   :  { %v84_v2 = vsub.f32 %v83_v1, %v80_v0  ;;  %v91_v4 = vsel %vm81_vm0, 1, %v134_v3 }
   0x4   :  { %v106_v6 = vrot.slane %v91_v4, 4 }
   0x5   :  { %v85_v5 = vand.u32 2147483647, %v84_v2 }
   0x6   :  { %v107_v8 = vadd.s32 %v106_v6, %v91_v4 }
   0x7   :  { %v86_v7 = vsel %vm81_vm0, %v85_v5, 0.0 }
   0x8   :  { %v88_v9 = vmax.f32 %v86_v7, 0.0  ;;  %v108_v10 = vrot.slane %v107_v8, 2 }
   0xa   :  { %v98_v11 = vrot.slane %v88_v9, 4  ;;  %v109_v12 = vadd.s32 %v108_v10, %v107_v8 }
   0xc   :  { %v99_v13 = vmax.f32 %v88_v9, %v98_v11  ;;  %v110_v14 = vrot.slane %v109_v12, 1 }
   0xe   :  { %v100_v15 = vrot.slane %v99_v13, 2  ;;  %v111_v16 = vadd.s32 %v110_v14, %v109_v12 }
  0x10   :  { %v101_v17 = vmax.f32 %v99_v13, %v100_v15  ;;  %112 = vst [vmem:[%s169_s3] sm:$0x1] %v111_v16 }
  0x12   :  { %v102_v18 = vrot.slane %v101_v17, 1 }
  0x14   :  { %v103_v19 = vmax.f32 %v101_v17, %v102_v18 }
  0x16   :  { %104 = vst [vmem:[%s170_s2] sm:$0x1] %v103_v19 }

// kernel: berhu_loss.3
= control target key start
LH: loop header
LB: loop body
LE: loop exit
PB: predicated region body
PF: predicated region fallthrough
CT: control target
= control target key end

     0   :  { %vm74_vm0 = vcmask 1040384   ;;  %s155_s16 = smov 1e-30   ;;  %s188_s0 = inlined_call_operand.vmem [shape: f32[1,128], index: 0, kind: input, shape index: {}]   ;;  %s189_s1 = inlined_call_operand.vmem [shape: f32[8,128], index: 1, kind: input, shape index: {}]   ;;  %s190_s2 = inlined_call_operand.vmem [shape: f32[8,128], index: 2, kind: input, shape index: {}]   ;;  %s191_s3 = inlined_call_operand.vmem [shape: f32[1,128], index: 3, kind: output, shape index: {}]  }
   0x1   :  { %v73_v0 = vld [vmem:[%s188_s0] sm:$0x1] }
   0x2   :  { %v75_v1 = vsel %vm74_vm0, %v73_v0, -inf  ;;  %v102_v11 = vld [vmem:[%s190_s2] sm:$0xff] }
   0x3   :  { %76 = vmax.xlane.f32.xlu0 %v75_v1  ;;  %v105_v12 = vld [vmem:[%s189_s1] sm:$0xff]  ;;  %vm103_vm1 = vcmp.ne.f32.partialorder %v102_v11, 255.0 }
   0x4   :  { %v106_v13 = vsub.f32 %v105_v12, %v102_v11 }
   0x6   :  { %v107_v14 = vand.u32 2147483647, %v106_v13 }
   0x8   :  { %v108_v15 = vsel %vm103_vm1, %v107_v14, 0.0 }
   0x9   :  { %v109_v16 = vmul.f32 %v108_v15, %v108_v15 }
  0x90   :  { %v77_v2 = vpop.xlane.xlu0 %76 }
  0x91   :  { %v78_v3 = vrot.slane %v77_v2, 4 }
  0x93   :  { %v79_v4 = vmax.f32 %v77_v2, %v78_v3 }
  0x95   :  { %v80_v5 = vrot.slane %v79_v4, 2 }
  0x97   :  { %v81_v6 = vmax.f32 %v79_v4, %v80_v5 }
  0x99   :  { %v82_v7 = vrot.slane %v81_v6, 1 }
  0x9b   :  { %v83_v8 = vmax.f32 %v81_v6, %v82_v7 }
  0x9d   :  { %148 = vpush %v83_v8 }
  0xce   :  { %s149_s14 = spop %148 }
  0xcf   :  { %s85_s15 = smul.f32 0.2, %s149_s14 }
  0xd1   :  { %s88_s17 = smax.f32 %s155_s16, %s85_s15  ;;  %p86_p0 = scmp.gt.f32.partialorder %s85_s15, 0.0 }
  0xd2   :  { %v89_v9 = vstv %s88_s17  ;;  %s94_s22 = smul.f32 0.5, %s85_s15 }
  0xd3   :  { %153 = vrcp.f32 %v89_v9  ;;  %s193_s15 = smov (!%p86_p0, %s85_s15), inf }
  0xd4   :  { %v114_v19 = vstv %s193_s15  ;;  %v112_v20 = vstv %s94_s22 }
  0xd5   :  { %vm115_vm2 = vcmp.le.f32.partialorder %v108_v15, %v114_v19 }
  0xdd   :  { %v154_v10 = vpop.eup %153 }
  0xde   :  { %150 = vpush %v154_v10 }
 0x10f   :  { %s151_s21 = spop %150 }
 0x110   :  { %s92_s23 = smul.f32 0.5, %s151_s21 }
 0x112   :  { %s195_s23 = smov (!%p86_p0, %s92_s23), 0.0 }
 0x113   :  { %v110_v17 = vstv %s195_s23 }
 0x114   :  { %v111_v18 = vmul.f32 %v110_v17, %v109_v16 }
 0x116   :  { %v113_v21 = vadd.f32 %v112_v20, %v111_v18 }
 0x118   :  { %v116_v22 = vsel %vm115_vm2, %v108_v15, %v113_v21 }
 0x119   :  { %v125_v23 = vrot.slane %v116_v22, 4 }
 0x11b   :  { %v126_v24 = vadd.f32 %v125_v23, %v116_v22 }
 0x11d   :  { %v127_v25 = vrot.slane %v126_v24, 2 }
 0x11f   :  { %v128_v26 = vadd.f32 %v127_v25, %v126_v24 }
 0x121   :  { %v129_v27 = vrot.slane %v128_v26, 1 }
 0x123   :  { %v130_v28 = vadd.f32 %v129_v27, %v128_v26 }
 0x125   :  { %131 = vst [vmem:[%s191_s3] sm:$0x1] %v130_v28 }

</bundles_post_ra>
